<compile_context>
chip_gen: v5e
topology: v5e:2x2
jax: 0.10.0
libtpu: 0.0.40
codegen_flags: <defaults>
</compile_context>

<pallas_src>
import jax
import jax.numpy as jnp
import numpy as np
from jax.experimental import pallas as pl
from jax.experimental.pallas import tpu as pltpu


def _round_up(x, m):
    return ((x + m - 1) // m) * m


# -----------------------------------------------------------------------------
# Fused kernel: one grid step == one batch element; everything stays in VMEM.
#   xp_ref   (1, Mg, K1)  bf16  backbone input patches, grouped by proj kernel
#                                position (dh, dw); each group padded to GS rows
#   mask_ref (Mg, 1)      f32   1.0 for real feature pixels, 0.0 for spatial /
#                                group padding rows
#   wb_ref   (K1, Fd)     bf16  backbone conv weight (im2col form)
#   bb_ref   (1, Fd)      f32   backbone bias
#   wp_ref   (ph*pw, Fd, E) bf16  proj conv weight, one (Fd, E) mat per (dh, dw)
#   pb_ref   (1, E)       f32   proj bias
#   o_ref    (1, gh*gw, E) f32  embedded patches for this batch element
# -----------------------------------------------------------------------------
def _hybrid_embed_kernel(xp_ref, mask_ref, wb_ref, bb_ref, wp_ref, pb_ref, o_ref):
    n_groups, _, e = wp_ref.shape
    mg = xp_ref.shape[1]
    gs = mg // n_groups                 # rows per kernel-position group (8-aligned)
    npatch = o_ref.shape[1]

    # Backbone conv (kernel == stride) as a single matmul; bf16 operands, f32 acc.
    feat = jnp.dot(xp_ref[0], wb_ref[...], preferred_element_type=jnp.float32)
    feat = jnp.maximum(feat + bb_ref[...], 0.0)
    # Masking realizes F.pad(feature_map) (and the group padding) without ever
    # materializing a padded feature map: padded rows contribute exact zeros.
    featb = (feat * mask_ref[...]).astype(jnp.bfloat16)

    # Proj conv (kernel == stride == patch_size), decomposed over kernel
    # positions: out = bias + sum_g feat_group_g @ Wp[g].  Each group is a
    # contiguous, 8-aligned block of rows, so only static slices + 2-D matmuls.
    acc = jnp.broadcast_to(pb_ref[...], (gs, e))
    for g in range(n_groups):
        blk = featb[g * gs:(g + 1) * gs, :]
        acc = acc + jnp.dot(blk, wp_ref[g], preferred_element_type=jnp.float32)

    o_ref[0] = acc[:npatch, :].astype(o_ref.dtype)


def _group_gather_plan(f_h, f_w, ph, pw):
    """Row-gather indices + validity mask that reorder the backbone output
    pixels into per-(dh, dw) proj-kernel-position groups, each padded to a
    multiple of 8 rows, so the in-kernel proj conv needs only aligned slices."""
    div_h, mod_h = divmod(f_h, ph)
    div_w, mod_w = divmod(f_w, pw)
    gh = div_h + (1 if mod_h else 0)
    gw = div_w + (1 if mod_w else 0)
    gs = _round_up(gh * gw, 8)
    src = np.full((ph * pw * gs,), -1, dtype=np.int32)
    for dh in range(ph):
        for dw in range(pw):
            g = dh * pw + dw
            for i in range(gh):
                for j in range(gw):
                    h, w = i * ph + dh, j * pw + dw
                    if h < f_h and w < f_w:
                        src[g * gs + i * gw + j] = h * f_w + w
    mask = (src >= 0).astype(np.float32)
    return np.maximum(src, 0).astype(np.int32), mask, gs


# -----------------------------------------------------------------------------
# HybridEmbed in JAX + Pallas
# -----------------------------------------------------------------------------
class HybridEmbedPallas:
    def __init__(self, img_size, patch_size, in_chans, feature_dim, embed_dim, key):
        if isinstance(patch_size, int):
            patch_size = (patch_size, patch_size)
        self.img_size = tuple(img_size)
        self.patch_size = tuple(patch_size)
        self.in_chans = in_chans
        self.feature_dim = feature_dim
        self.embed_dim = embed_dim

        k1, k2, k3, k4 = jax.random.split(key, 4)
        # synthetic backbone: Conv2d(in_chans, feature_dim, kernel=2, stride=2) + ReLU
        self.bb_kernel = (2, 2)
        self.bb_w = 0.1 * jax.random.normal(
            k1, (2, 2, in_chans, feature_dim), jnp.float32)          # HWIO
        self.bb_b = 0.1 * jax.random.normal(k2, (feature_dim,), jnp.float32)

        # mimic the __init__ probe with a zero image to derive feature_size
        f_h = img_size[0] // self.bb_kernel[0]
        f_w = img_size[1] // self.bb_kernel[1]
        div_h, mod_h = divmod(f_h, self.patch_size[0])
        div_w, mod_w = divmod(f_w, self.patch_size[1])
        self.feature_size = (self.patch_size[0] * (div_h + (1 if mod_h > 0 else 0)),
                             self.patch_size[1] * (div_w + (1 if mod_w > 0 else 0)))
        self.grid_size = (self.feature_size[0] // self.patch_size[0],
                          self.feature_size[1] // self.patch_size[1])
        self.num_patches = self.grid_size[0] * self.grid_size[1]

        # proj: Conv2d(feature_dim, embed_dim, kernel=patch_size, stride=patch_size)
        self.proj_w = 0.05 * jax.random.normal(
            k3, (self.patch_size[0], self.patch_size[1], feature_dim, embed_dim),
            jnp.float32)                                              # HWIO
        self.proj_b = 0.05 * jax.random.normal(k4, (embed_dim,), jnp.float32)

        # kernel-ready parameters: bf16 MXU operands, f32 biases (computed once)
        kh, kw = self.bb_kernel
        self.wb2d = self.bb_w.reshape(kh * kw * in_chans, feature_dim).astype(jnp.bfloat16)
        self.bb_b2d = self.bb_b.reshape(1, feature_dim)
        self.wp3d = self.proj_w.reshape(self.patch_size[0] * self.patch_size[1],
                                        feature_dim, embed_dim).astype(jnp.bfloat16)
        self.pb2d = self.proj_b.reshape(1, embed_dim)

    def __call__(self, x_nchw):
        B, cin, H, W = x_nchw.shape
        kh, kw = self.bb_kernel
        ph, pw = self.patch_size
        f_h, f_w = H // kh, W // kw
        div_h, mod_h = divmod(f_h, ph)
        div_w, mod_w = divmod(f_w, pw)
        gh = div_h + (1 if mod_h else 0)
        gw = div_w + (1 if mod_w else 0)
        Hp, Wp = gh * ph, gw * pw
        pad_H, pad_W = Hp - f_h, Wp - f_w
        npatch = gh * gw
        K1 = kh * kw * cin
        E = self.embed_dim
        Fd = self.feature_dim

        # NCHW -> NHWC, then patchify the *raw input* (one cheap pass over a
        # tensor that must be streamed once anyway). Rows are pre-ordered by the
        # proj kernel position so the Pallas kernel never reshapes / gathers.
        x = jnp.transpose(x_nchw, (0, 2, 3, 1))
        xp = x.reshape(B, f_h, kh, f_w, kw, cin)
        xp = xp.transpose(0, 1, 3, 2, 4, 5).reshape(B, f_h * f_w, K1)
        src, mask, gs = _group_gather_plan(f_h, f_w, ph, pw)
        Mg = src.shape[0]
        assert Mg == ph * pw * gs
        xpg = jnp.take(xp, jnp.asarray(src), axis=1).astype(jnp.bfloat16)   # (B, Mg, K1)
        mask2d = jnp.asarray(mask.reshape(Mg, 1), jnp.float32)

        proj_x = pl.pallas_call(
            _hybrid_embed_kernel,
            out_shape=jax.ShapeDtypeStruct((B, npatch, E), jnp.float32),
            grid=(B,),
            in_specs=[
                pl.BlockSpec((1, Mg, K1), lambda b: (b, 0, 0)),
                pl.BlockSpec((Mg, 1), lambda b: (0, 0)),
                pl.BlockSpec((K1, Fd), lambda b: (0, 0)),
                pl.BlockSpec((1, Fd), lambda b: (0, 0)),
                pl.BlockSpec((ph * pw, Fd, E), lambda b: (0, 0, 0)),
                pl.BlockSpec((1, E), lambda b: (0, 0)),
            ],
            out_specs=pl.BlockSpec((1, npatch, E), lambda b: (b, 0, 0)),
            compiler_params=pltpu.CompilerParams(
                dimension_semantics=("parallel",)),   # B>=2 blocks -> both v7x TCs busy
        )(xpg, mask2d, self.wb2d, self.bb_b2d, self.wp3d, self.pb2d)

        size_changed = (Hp != self.feature_size[0]) or (Wp != self.feature_size[1])
        return (proj_x, (pad_W, pad_H), {'height': Hp, 'width': Wp}, size_changed)


# -----------------------------------------------------------------------------
# Reference (plain JAX, same bf16 operand rounding, f32 accumulation)
# -----------------------------------------------------------------------------
def _forward_ref(mod: HybridEmbedPallas, x_nchw):
    r = lambda a: a.astype(jnp.bfloat16).astype(jnp.float32)
    x = jnp.transpose(x_nchw, (0, 2, 3, 1))
    feat = jax.lax.conv_general_dilated(
        r(x), r(mod.bb_w), window_strides=mod.bb_kernel, padding='VALID',
        dimension_numbers=('NHWC', 'HWIO', 'NHWC'),
        precision=jax.lax.Precision.HIGHEST) + mod.bb_b
    feat = jnp.maximum(feat, 0.0)
    B, f_h, f_w, _ = feat.shape
    ph, pw = mod.patch_size
    div_h, mod_h = divmod(f_h, ph)
    div_w, mod_w = divmod(f_w, pw)
    pad_H = ph * (div_h + (1 if mod_h else 0)) - f_h
    pad_W = pw * (div_w + (1 if mod_w else 0)) - f_w
    feat = jnp.pad(r(feat), ((0, 0), (0, pad_H), (0, pad_W), (0, 0)))
    proj = jax.lax.conv_general_dilated(
        feat, r(mod.proj_w), window_strides=(ph, pw), padding='VALID',
        dimension_numbers=('NHWC', 'HWIO', 'NHWC'),
        precision=jax.lax.Precision.HIGHEST) + mod.proj_b
    return proj.reshape(B, -1, mod.embed_dim), (pad_W, pad_H)


# -----------------------------------------------------------------------------
if __name__ == "__main__":
    key = jax.random.PRNGKey(0)
    k_param, k_in = jax.random.split(key)

    B, in_chans, H, W = 2, 4, 16, 16
    feature_dim, embed_dim = 8, 32
    patch_size = (3, 3)          # 8x8 feature map -> padded to 9x9 (pad = 1)

    module = HybridEmbedPallas((H, W), patch_size, in_chans,
                               feature_dim, embed_dim, k_param)
    x = jax.random.normal(k_in, (B, in_chans, H, W), jnp.float32)

    proj_x, pads, dims, changed = module(x)
    proj_x = jax.block_until_ready(proj_x)

    ref_proj, ref_pads = _forward_ref(module, x)
    np.testing.assert_allclose(np.asarray(proj_x), np.asarray(ref_proj),
                               rtol=5e-3, atol=5e-3)
    assert pads == ref_pads
    assert proj_x.shape == (B, module.num_patches, embed_dim)
    assert dims == {'height': module.feature_size[0], 'width': module.feature_size[1]}
    assert not changed

    print("KERNEL_OK")
</pallas_src>

<mosaic_0001>
module attributes {stable_mosaic.version = 11 : i64} {
  func.func @_hybrid_embed_kernel(%arg0: i32, %arg1: memref<1x144x16xbf16, #tpu.memory_space<vmem>>, %arg2: memref<144x1xf32, #tpu.memory_space<vmem>>, %arg3: memref<16x8xbf16, #tpu.memory_space<vmem>>, %arg4: memref<1x8xf32, #tpu.memory_space<vmem>>, %arg5: memref<9x8x32xbf16, #tpu.memory_space<vmem>>, %arg6: memref<1x32xf32, #tpu.memory_space<vmem>>, %arg7: memref<1x9x32xf32, #tpu.memory_space<vmem>>) attributes {dimension_semantics = [#tpu.dimension_semantics<parallel>], iteration_bounds = array<i64: 2>, scalar_prefetch = 0 : i64, scratch_operands = 0 : i64, tpu.core_type = #tpu.core_type<tc>, window_params = [{transform_indices = @transform_0, window_bounds = array<i64: 1, 144, 16>}, {pipeline_mode = #tpu.pipeline_mode<synchronous>, transform_indices = @transform_1, window_bounds = array<i64: 144, 1>}, {pipeline_mode = #tpu.pipeline_mode<synchronous>, transform_indices = @transform_2, window_bounds = array<i64: 16, 8>}, {pipeline_mode = #tpu.pipeline_mode<synchronous>, transform_indices = @transform_3, window_bounds = array<i64: 1, 8>}, {pipeline_mode = #tpu.pipeline_mode<synchronous>, transform_indices = @transform_4, window_bounds = array<i64: 9, 8, 32>}, {pipeline_mode = #tpu.pipeline_mode<synchronous>, transform_indices = @transform_5, window_bounds = array<i64: 1, 32>}, {transform_indices = @transform_6, window_bounds = array<i64: 1, 9, 32>}]} {
    %c0 = arith.constant 0 : index
    %c0_0 = arith.constant 0 : index
    %c0_1 = arith.constant 0 : index
    %0 = vector.load %arg1[%c0, %c0_0, %c0_1] : memref<1x144x16xbf16, #tpu.memory_space<vmem>>, vector<1x144x16xbf16>
    %1 = vector.shape_cast %0 : vector<1x144x16xbf16> to vector<144x16xbf16>
    %c0_2 = arith.constant 0 : index
    %c0_3 = arith.constant 0 : index
    %2 = vector.load %arg3[%c0_2, %c0_3] : memref<16x8xbf16, #tpu.memory_space<vmem>>, vector<16x8xbf16>
    %cst = arith.constant dense<0.000000e+00> : vector<144x8xf32>
    %3 = tpu.matmul %1, %2, %cst {dimension_numbers = #tpu.dot_dimension_numbers<[1], [0], [0], [1], [0, 0, 1, 1], [], []>} : vector<144x16xbf16>, vector<16x8xbf16>, vector<144x8xf32> -> vector<144x8xf32>
    %c0_4 = arith.constant 0 : index
    %c0_5 = arith.constant 0 : index
    %4 = vector.load %arg4[%c0_4, %c0_5] : memref<1x8xf32, #tpu.memory_space<vmem>>, vector<1x8xf32>
    %5 = vector.broadcast %4 : vector<1x8xf32> to vector<144x8xf32>
    %6 = arith.addf %3, %5 : vector<144x8xf32>
    %cst_6 = arith.constant 0.000000e+00 : f32
    %7 = vector.broadcast %cst_6 : f32 to vector<144x8xf32>
    %8 = arith.maximumf %6, %7 : vector<144x8xf32>
    %c0_7 = arith.constant 0 : index
    %c0_8 = arith.constant 0 : index
    %9 = vector.load %arg2[%c0_7, %c0_8] : memref<144x1xf32, #tpu.memory_space<vmem>>, vector<144x1xf32>
    %10 = vector.broadcast %9 : vector<144x1xf32> to vector<144x8xf32>
    %11 = arith.mulf %8, %10 : vector<144x8xf32>
    %12 = arith.truncf %11 : vector<144x8xf32> to vector<144x8xbf16>
    %c0_9 = arith.constant 0 : index
    %c0_10 = arith.constant 0 : index
    %13 = vector.load %arg6[%c0_9, %c0_10] : memref<1x32xf32, #tpu.memory_space<vmem>>, vector<1x32xf32>
    %14 = vector.shape_cast %13 : vector<1x32xf32> to vector<1x32xf32>
    %15 = vector.broadcast %14 : vector<1x32xf32> to vector<16x32xf32>
    %16 = vector.extract_strided_slice %12 {offsets = [0, 0], sizes = [16, 8], strides = [1, 1]} : vector<144x8xbf16> to vector<16x8xbf16>
    %c0_11 = arith.constant 0 : index
    %c0_12 = arith.constant 0 : index
    %c0_13 = arith.constant 0 : index
    %17 = vector.load %arg5[%c0_11, %c0_12, %c0_13] : memref<9x8x32xbf16, #tpu.memory_space<vmem>>, vector<1x8x32xbf16>
    %18 = vector.shape_cast %17 : vector<1x8x32xbf16> to vector<8x32xbf16>
    %cst_14 = arith.constant dense<0.000000e+00> : vector<16x32xf32>
    %19 = tpu.matmul %16, %18, %cst_14 {dimension_numbers = #tpu.dot_dimension_numbers<[1], [0], [0], [1], [0, 0, 1, 1], [], []>} : vector<16x8xbf16>, vector<8x32xbf16>, vector<16x32xf32> -> vector<16x32xf32>
    %20 = arith.addf %15, %19 : vector<16x32xf32>
    %21 = vector.extract_strided_slice %12 {offsets = [16, 0], sizes = [16, 8], strides = [1, 1]} : vector<144x8xbf16> to vector<16x8xbf16>
    %c1 = arith.constant 1 : index
    %c0_15 = arith.constant 0 : index
    %c0_16 = arith.constant 0 : index
    %22 = vector.load %arg5[%c1, %c0_15, %c0_16] : memref<9x8x32xbf16, #tpu.memory_space<vmem>>, vector<1x8x32xbf16>
    %23 = vector.shape_cast %22 : vector<1x8x32xbf16> to vector<8x32xbf16>
    %cst_17 = arith.constant dense<0.000000e+00> : vector<16x32xf32>
    %24 = tpu.matmul %21, %23, %cst_17 {dimension_numbers = #tpu.dot_dimension_numbers<[1], [0], [0], [1], [0, 0, 1, 1], [], []>} : vector<16x8xbf16>, vector<8x32xbf16>, vector<16x32xf32> -> vector<16x32xf32>
    %25 = arith.addf %20, %24 : vector<16x32xf32>
    %26 = vector.extract_strided_slice %12 {offsets = [32, 0], sizes = [16, 8], strides = [1, 1]} : vector<144x8xbf16> to vector<16x8xbf16>
    %c2 = arith.constant 2 : index
    %c0_18 = arith.constant 0 : index
    %c0_19 = arith.constant 0 : index
    %27 = vector.load %arg5[%c2, %c0_18, %c0_19] : memref<9x8x32xbf16, #tpu.memory_space<vmem>>, vector<1x8x32xbf16>
    %28 = vector.shape_cast %27 : vector<1x8x32xbf16> to vector<8x32xbf16>
    %cst_20 = arith.constant dense<0.000000e+00> : vector<16x32xf32>
    %29 = tpu.matmul %26, %28, %cst_20 {dimension_numbers = #tpu.dot_dimension_numbers<[1], [0], [0], [1], [0, 0, 1, 1], [], []>} : vector<16x8xbf16>, vector<8x32xbf16>, vector<16x32xf32> -> vector<16x32xf32>
    %30 = arith.addf %25, %29 : vector<16x32xf32>
    %31 = vector.extract_strided_slice %12 {offsets = [48, 0], sizes = [16, 8], strides = [1, 1]} : vector<144x8xbf16> to vector<16x8xbf16>
    %c3 = arith.constant 3 : index
    %c0_21 = arith.constant 0 : index
    %c0_22 = arith.constant 0 : index
    %32 = vector.load %arg5[%c3, %c0_21, %c0_22] : memref<9x8x32xbf16, #tpu.memory_space<vmem>>, vector<1x8x32xbf16>
    %33 = vector.shape_cast %32 : vector<1x8x32xbf16> to vector<8x32xbf16>
    %cst_23 = arith.constant dense<0.000000e+00> : vector<16x32xf32>
    %34 = tpu.matmul %31, %33, %cst_23 {dimension_numbers = #tpu.dot_dimension_numbers<[1], [0], [0], [1], [0, 0, 1, 1], [], []>} : vector<16x8xbf16>, vector<8x32xbf16>, vector<16x32xf32> -> vector<16x32xf32>
    %35 = arith.addf %30, %34 : vector<16x32xf32>
    %36 = vector.extract_strided_slice %12 {offsets = [64, 0], sizes = [16, 8], strides = [1, 1]} : vector<144x8xbf16> to vector<16x8xbf16>
    %c4 = arith.constant 4 : index
    %c0_24 = arith.constant 0 : index
    %c0_25 = arith.constant 0 : index
    %37 = vector.load %arg5[%c4, %c0_24, %c0_25] : memref<9x8x32xbf16, #tpu.memory_space<vmem>>, vector<1x8x32xbf16>
    %38 = vector.shape_cast %37 : vector<1x8x32xbf16> to vector<8x32xbf16>
    %cst_26 = arith.constant dense<0.000000e+00> : vector<16x32xf32>
    %39 = tpu.matmul %36, %38, %cst_26 {dimension_numbers = #tpu.dot_dimension_numbers<[1], [0], [0], [1], [0, 0, 1, 1], [], []>} : vector<16x8xbf16>, vector<8x32xbf16>, vector<16x32xf32> -> vector<16x32xf32>
    %40 = arith.addf %35, %39 : vector<16x32xf32>
    %41 = vector.extract_strided_slice %12 {offsets = [80, 0], sizes = [16, 8], strides = [1, 1]} : vector<144x8xbf16> to vector<16x8xbf16>
    %c5 = arith.constant 5 : index
    %c0_27 = arith.constant 0 : index
    %c0_28 = arith.constant 0 : index
    %42 = vector.load %arg5[%c5, %c0_27, %c0_28] : memref<9x8x32xbf16, #tpu.memory_space<vmem>>, vector<1x8x32xbf16>
    %43 = vector.shape_cast %42 : vector<1x8x32xbf16> to vector<8x32xbf16>
    %cst_29 = arith.constant dense<0.000000e+00> : vector<16x32xf32>
    %44 = tpu.matmul %41, %43, %cst_29 {dimension_numbers = #tpu.dot_dimension_numbers<[1], [0], [0], [1], [0, 0, 1, 1], [], []>} : vector<16x8xbf16>, vector<8x32xbf16>, vector<16x32xf32> -> vector<16x32xf32>
    %45 = arith.addf %40, %44 : vector<16x32xf32>
    %46 = vector.extract_strided_slice %12 {offsets = [96, 0], sizes = [16, 8], strides = [1, 1]} : vector<144x8xbf16> to vector<16x8xbf16>
    %c6 = arith.constant 6 : index
    %c0_30 = arith.constant 0 : index
    %c0_31 = arith.constant 0 : index
    %47 = vector.load %arg5[%c6, %c0_30, %c0_31] : memref<9x8x32xbf16, #tpu.memory_space<vmem>>, vector<1x8x32xbf16>
    %48 = vector.shape_cast %47 : vector<1x8x32xbf16> to vector<8x32xbf16>
    %cst_32 = arith.constant dense<0.000000e+00> : vector<16x32xf32>
    %49 = tpu.matmul %46, %48, %cst_32 {dimension_numbers = #tpu.dot_dimension_numbers<[1], [0], [0], [1], [0, 0, 1, 1], [], []>} : vector<16x8xbf16>, vector<8x32xbf16>, vector<16x32xf32> -> vector<16x32xf32>
    %50 = arith.addf %45, %49 : vector<16x32xf32>
    %51 = vector.extract_strided_slice %12 {offsets = [112, 0], sizes = [16, 8], strides = [1, 1]} : vector<144x8xbf16> to vector<16x8xbf16>
    %c7 = arith.constant 7 : index
    %c0_33 = arith.constant 0 : index
    %c0_34 = arith.constant 0 : index
    %52 = vector.load %arg5[%c7, %c0_33, %c0_34] : memref<9x8x32xbf16, #tpu.memory_space<vmem>>, vector<1x8x32xbf16>
    %53 = vector.shape_cast %52 : vector<1x8x32xbf16> to vector<8x32xbf16>
    %cst_35 = arith.constant dense<0.000000e+00> : vector<16x32xf32>
    %54 = tpu.matmul %51, %53, %cst_35 {dimension_numbers = #tpu.dot_dimension_numbers<[1], [0], [0], [1], [0, 0, 1, 1], [], []>} : vector<16x8xbf16>, vector<8x32xbf16>, vector<16x32xf32> -> vector<16x32xf32>
    %55 = arith.addf %50, %54 : vector<16x32xf32>
    %56 = vector.extract_strided_slice %12 {offsets = [128, 0], sizes = [16, 8], strides = [1, 1]} : vector<144x8xbf16> to vector<16x8xbf16>
    %c8 = arith.constant 8 : index
    %c0_36 = arith.constant 0 : index
    %c0_37 = arith.constant 0 : index
    %57 = vector.load %arg5[%c8, %c0_36, %c0_37] : memref<9x8x32xbf16, #tpu.memory_space<vmem>>, vector<1x8x32xbf16>
    %58 = vector.shape_cast %57 : vector<1x8x32xbf16> to vector<8x32xbf16>
    %cst_38 = arith.constant dense<0.000000e+00> : vector<16x32xf32>
    %59 = tpu.matmul %56, %58, %cst_38 {dimension_numbers = #tpu.dot_dimension_numbers<[1], [0], [0], [1], [0, 0, 1, 1], [], []>} : vector<16x8xbf16>, vector<8x32xbf16>, vector<16x32xf32> -> vector<16x32xf32>
    %60 = arith.addf %55, %59 : vector<16x32xf32>
    %61 = vector.extract_strided_slice %60 {offsets = [0, 0], sizes = [9, 32], strides = [1, 1]} : vector<16x32xf32> to vector<9x32xf32>
    %c0_39 = arith.constant 0 : index
    %c0_40 = arith.constant 0 : index
    %c0_41 = arith.constant 0 : index
    %62 = vector.load %arg7[%c0_39, %c0_40, %c0_41] : memref<1x9x32xf32, #tpu.memory_space<vmem>>, vector<1x9x32xf32>
    %63 = vector.shape_cast %62 : vector<1x9x32xf32> to vector<9x32xf32>
    %64 = vector.shape_cast %61 : vector<9x32xf32> to vector<1x9x32xf32>
    tpu.vector_store %arg7[%c0_39, %c0_40, %c0_41], %64 {strides = array<i32>} : memref<1x9x32xf32, #tpu.memory_space<vmem>>, vector<1x9x32xf32>,
    return
  }
  func.func @transform_0(%arg0: i32) -> (i32, i32, i32) {
    %c0_i32 = arith.constant 0 : i32
    %c0_i32_0 = arith.constant 0 : i32
    %c0_i32_1 = arith.constant 0 : i32
    return %arg0, %c0_i32, %c0_i32_0 : i32, i32, i32
  }
  func.func @transform_1(%arg0: i32) -> (i32, i32) {
    %c0_i32 = arith.constant 0 : i32
    %c0_i32_0 = arith.constant 0 : i32
    %c0_i32_1 = arith.constant 0 : i32
    return %c0_i32, %c0_i32_0 : i32, i32
  }
  func.func @transform_2(%arg0: i32) -> (i32, i32) {
    %c0_i32 = arith.constant 0 : i32
    %c0_i32_0 = arith.constant 0 : i32
    %c0_i32_1 = arith.constant 0 : i32
    return %c0_i32, %c0_i32_0 : i32, i32
  }
  func.func @transform_3(%arg0: i32) -> (i32, i32) {
    %c0_i32 = arith.constant 0 : i32
    %c0_i32_0 = arith.constant 0 : i32
    %c0_i32_1 = arith.constant 0 : i32
    return %c0_i32, %c0_i32_0 : i32, i32
  }
  func.func @transform_4(%arg0: i32) -> (i32, i32, i32) {
    %c0_i32 = arith.constant 0 : i32
    %c0_i32_0 = arith.constant 0 : i32
    %c0_i32_1 = arith.constant 0 : i32
    %c0_i32_2 = arith.constant 0 : i32
    return %c0_i32, %c0_i32_0, %c0_i32_1 : i32, i32, i32
  }
  func.func @transform_5(%arg0: i32) -> (i32, i32) {
    %c0_i32 = arith.constant 0 : i32
    %c0_i32_0 = arith.constant 0 : i32
    %c0_i32_1 = arith.constant 0 : i32
    return %c0_i32, %c0_i32_0 : i32, i32
  }
  func.func @transform_6(%arg0: i32) -> (i32, i32, i32) {
    %c0_i32 = arith.constant 0 : i32
    %c0_i32_0 = arith.constant 0 : i32
    %c0_i32_1 = arith.constant 0 : i32
    return %arg0, %c0_i32, %c0_i32_0 : i32, i32, i32
  }
}

</mosaic_0001>

<bundles_post_ra>
// kernel: tpu_custom_call.1
= control target key start
LH: loop header
LB: loop body
LE: loop exit
PB: predicated region body
PF: predicated region fallthrough
CT: control target
= control target key end

     0   :  { %s1045_s21 = smov 0   ;;  %s1229_s0 = inlined_call_operand.vmem [shape: bf16[2,144,16], index: 0, kind: input, shape index: {}]   ;;  %s1230_s1 = inlined_call_operand.vmem [shape: f32[144,1], index: 1, kind: input, shape index: {}]   ;;  %s1231_s2 = inlined_call_operand.vmem [shape: bf16[16,8], index: 2, kind: input, shape index: {}]   ;;  %s1232_s3 = inlined_call_operand.vmem [shape: f32[1,8], index: 3, kind: input, shape index: {}]   ;;  %s1233_s4 = inlined_call_operand.vmem [shape: bf16[9,8,32], index: 4, kind: input, shape index: {}]   ;;  %s1234_s5 = inlined_call_operand.vmem [shape: f32[1,32], index: 5, kind: input, shape index: {}]   ;;  %s1235_s6 = inlined_call_operand.vmem [shape: f32[2,9,32], index: 6, kind: output, shape index: {}]  }
   0x1 LB: > { %s897_s22 = sadd.s32 4294967295, %s1007_s21   ;;  %p901_p0 = scmp.ge.s32.totalorder %s1007_s21, 1  ;;  %s1007_s21 = sphi %s1045_s21, %s16_s21  }
   0x2   : > { %p212_p1 = scmp.lt.s32.totalorder %s1007_s21, 3 }
   0x4   : > { %p213_p2 = pnand %p901_p0, %p212_p1 }
   0x5   : > { %p242_p3 = scmp.lt.s32.totalorder (!%p213_p2), %s897_s22, 1 }
   0x6   : > { %216 = sbr.rel (%p213_p2) target bundleno = 387 (0x183), region = 44 }
   0xb   : > { %v983_v0 = vld [vmem:[%s1231_s2] sm:$0xff]  ;;  %v430_v1 = vld [vmem:[%s1230_s1 + $0x10] sm:$0xff]  ;;  %v1009_v2 = vmov 0   ;;  %s1237_s22 = smov (!%p242_p3, %s897_s22), 1  ;;  %vm328_vm0 = vcmask 130048   ;;  %v431_v7 = vld [vmem:[%s1230_s1 + $0x18] sm:$0xff] }
   0xc   : > { %996 = vset.pattern.permute.xlu0 %v1009_v2  ;;  %997 = vset.pattern.permute.xlu1 %v1009_v2  ;;  %v432_v3 = vld [vmem:[%s1230_s1 + $0x20] sm:$0xff]  ;;  %s986_s29 = smul.u32 72, %s1237_s22  ;;  %v433_v8 = vld [vmem:[%s1230_s1 + $0x28] sm:$0xff]  ;;  %v439_v16 = vld [vmem:[%s1230_s1 + $0x58] sm:$0xff]  ;;  %vm586_vm1 = vcmask 1043456   ;;  %vm582_vm2 = vcmask 64512  }
   0xd   : > { %363 = vmatpush.bf16.msra.mxu0 %v983_v0  ;;  %985 = vmatpush.bf16.msra.mxu2 %v983_v0  ;;  %v428_v9 = vld [vmem:[%s1230_s1] sm:$0xff]  ;;  %v429_v11 = vld [vmem:[%s1230_s1 + $0x8] sm:$0xff]  ;;  %v434_v17 = vld [vmem:[%s1230_s1 + $0x30] sm:$0xff]  ;;  %s973_s20 = sshll.u32 %s1237_s22, 4  ;;  %vm838_vm3 = vcmask 261120   ;;  %vm840_vm4 = vcmask 253952  }
   0xe   : > { %458 = vperm.xlu0 %996, %v430_v1   ;;  %984 = vmatpush.bf16.msra.mxu1 %v983_v0  ;;  %s1068_s8 = scalar_lea.vmem %s1229_s0, %s986_s29  ;;  %v436_v10 = vld [vmem:[%s1230_s1 + $0x40] sm:$0xff]  ;;  %v437_v12 = vld [vmem:[%s1230_s1 + $0x48] sm:$0xff]  ;;  %v442_v18 = vld [vmem:[%s1230_s1 + $0x70] sm:$0xff]  ;;  %s251_s25 = scalar_lea.vmem %s1235_s6, %s973_s20 }
   0xf   : > { %468 = vperm.xlu1 %997, %v432_v3   ;;  %998 = vset.pattern.permute.xlu2 %v1009_v2  ;;  %v974_v4 = vld [vmem:[%s1068_s8] sm:$0xff]  ;;  %v981_v5 = vld [vmem:[%s1068_s8 + $0x38] sm:$0xff]  ;;  %v979_v6 = vld [vmem:[%s1068_s8 + $0x28] sm:$0xff] }
  0x10   : > { %945 = vmatmul.msk.bf16.vlgmr.msra.gmra.mxu0 %vm328_vm0, %v974_v4  ;;  %952 = vmatmul.msk.bf16.vlgmr.msra.gmra.mxu2 %vm328_vm0, %v981_v5  ;;  %v975_v13 = vld [vmem:[%s1068_s8 + $0x8] sm:$0xff]  ;;  %v982_v14 = vld [vmem:[%s1068_s8 + $0x40] sm:$0xff]  ;;  %v980_v15 = vld [vmem:[%s1068_s8 + $0x30] sm:$0xff] }
  0x11   : > { %950 = vmatmul.msk.bf16.vlgmr.msra.gmra.mxu1 %vm328_vm0, %v979_v6  ;;  %448 = vperm.xlu2 %998, %v428_v9   ;;  %v443_v19 = vld [vmem:[%s1230_s1 + $0x78] sm:$0xff]  ;;  %v976_v20 = vld [vmem:[%s1068_s8 + $0x10] sm:$0xff]  ;;  %v445_v21 = vld [vmem:[%s1230_s1 + $0x88] sm:$0xff] }
  0x12   : > { %v440_v22 = vld [vmem:[%s1230_s1 + $0x60] sm:$0xff]  ;;  %v438_v23 = vld [vmem:[%s1230_s1 + $0x50] sm:$0xff]  ;;  %v435_v24 = vld [vmem:[%s1230_s1 + $0x38] sm:$0xff] }
  0x13   : > { %v977_v25 = vld [vmem:[%s1068_s8 + $0x18] sm:$0xff]  ;;  %v444_v26 = vld [vmem:[%s1230_s1 + $0x80] sm:$0xff]  ;;  %v441_v27 = vld [vmem:[%s1230_s1 + $0x68] sm:$0xff] }
  0x14   : > { %v978_v28 = vld [vmem:[%s1068_s8 + $0x20] sm:$0xff]  ;;  %v957_v47 = vld [vmem:[%s1233_s4 + $0x8] sm:$0xf]  ;;  %v959_v4 = vld [vmem:[%s1233_s4 + $0xc] sm:$0xf] }
  0x15   : > { %v576_v29 = vld [vmem:[%s1233_s4] sm:$0xf]  ;;  %v955_v34 = vld [vmem:[%s1233_s4 + $0x4] sm:$0xf]  ;;  %v646_v53 = vsel %vm586_vm1, %v957_v47, 0  ;;  %v675_v9 = vsel %vm586_vm1, %v959_v4, 0 }
  0x16   : > { %463 = vperm.xlu0 %996, %v431_v7   ;;  %v588_v30 = vsel %vm586_vm1, %v576_v29, 0  ;;  %v1143_v31 = vld [vmem:[%s1232_s3] ss:$0 sm:$0xff]  ;;  %v617_v36 = vsel %vm586_vm1, %v955_v34, 0  ;;  %655 = vmatpush.bf16.msra.mxu3 %v646_v53  ;;  %v963_v5 = vld [vmem:[%s1233_s4 + $0x14] sm:$0xf] }
  0x17   : > { %473 = vperm.xlu1 %997, %v433_v8   ;;  %597 = vmatpush.bf16.msrb.mxu1 %v588_v30  ;;  %v969_v34 = vld [vmem:[%s1233_s4 + $0x20] sm:$0xf]  ;;  %v967_v47 = vld [vmem:[%s1233_s4 + $0x1c] sm:$0xf] }
  0x18   : > { %626 = vmatpush.bf16.msrb.mxu2 %v617_v36 }
  0x19   : > { %453 = vperm.xlu2 %998, %v429_v11  }
  0x1b   : > { %684 = vmatpush.bf16.msra.mxu1 %v675_v9 }
  0x1e   : > { %488 = vperm.xlu0 %996, %v436_v10   ;;  %v733_v10 = vsel %vm586_vm1, %v963_v5, 0 }
  0x1f   : > { %493 = vperm.xlu1 %997, %v437_v12   ;;  %742 = vmatpush.bf16.msrb.mxu3 %v733_v10 }
  0x20   : > { %946 = vmatmul.msk.bf16.gmra.mxu0 %vm328_vm0, %v975_v13  ;;  %953 = vmatmul.msk.bf16.gmra.mxu2 %vm328_vm0, %v982_v14 }
  0x21   : > { %951 = vmatmul.msk.bf16.gmra.mxu1 %vm328_vm0, %v980_v15  ;;  %498 = vperm.xlu2 %998, %v438_v23  }
  0x26   : > { %503 = vperm.xlu0 %996, %v439_v16  }
  0x27   : > { %478 = vperm.xlu1 %997, %v434_v17  }
  0x29   : > { %483 = vperm.xlu2 %998, %v435_v24  }
  0x2e   : > { %518 = vperm.xlu0 %996, %v442_v18  }
  0x2f   : > { %523 = vperm.xlu1 %997, %v443_v19  }
  0x30   : > { %947 = vmatmul.msk.bf16.gmra.mxu0 %vm328_vm0, %v976_v20 }
  0x31   : > { %528 = vperm.xlu2 %998, %v444_v26  }
  0x36   : > { %533 = vperm.xlu0 %996, %v445_v21   ;;  %v961_v21 = vld [vmem:[%s1233_s4 + $0x10] sm:$0xf] }
  0x37   : > { %508 = vperm.xlu1 %997, %v440_v22   ;;  %v704_v22 = vsel %vm586_vm1, %v961_v21, 0 }
  0x38   : > { %713 = vmatpush.bf16.msra.mxu2 %v704_v22 }
  0x39   : > { %513 = vperm.xlu2 %998, %v441_v27  }
  0x40   : > { %948 = vmatmul.msk.bf16.gmra.mxu0 %vm328_vm0, %v977_v25 }
  0x50   : > { %949 = vmatmul.msk.bf16.gmra.mxu0 %vm328_vm0, %v978_v28 }
  0x6b   : > { %v449_v33 = vpop.permute.xlu2 %448 }
  0x73   : > { %v454_v41 = vpop.permute.xlu2 %453 }
  0x7b   : > { %v499_v12 = vpop.permute.xlu2 %498 }
  0x80   : > { %v459_v51 = vpop.permute.xlu0 %458 }
  0x81   : > { %v469_v52 = vpop.permute.xlu1 %468 }
  0x83   : > { %v484_v28 = vpop.permute.xlu2 %483 }
  0x88   : > { %v464_v60 = vpop.permute.xlu0 %463 }
  0x89   : > { %v474_v61 = vpop.permute.xlu1 %473 }
  0x8d   : > { %v365_v32 = vpop.f32.mrf.mxu0 }
  0x8e   : > { %v366_v35 = vadd.f32 %v1143_v31, %v365_v32  ;;  %v390_v0 = vpop.f32.mrf.mxu1 }
  0x8f   : > { %v391_v26 = vadd.f32 %v1143_v31, %v390_v0 }
  0x90   : > { %v410_v37 = vmax.f32 %v366_v35, 0.0  ;;  %v1172_v15 = vpop.permute.xlu0 %488 }
  0x91   : > { %v1170_v14 = vpop.permute.xlu1 %493 }
  0x92   : > { %v536_v39 = vmul.f32 %v449_v33, %v410_v37  ;;  %v965_v33 = vld [vmem:[%s1233_s4 + $0x18] sm:$0xf] }
  0x93   : > { %v1158_v2 = vpop.f32.mrf.mxu2 }
  0x94   : > { %v554_v43 = vpack.c.bf16 %v536_v39, %v536_v39  ;;  %v762_v39 = vsel %vm586_vm1, %v965_v33, 0 }
  0x95   : > { %v367_v38 = vpop.f32.mrf.mxu0 }
  0x96   : > { %v368_v40 = vadd.f32 %v1143_v31, %v367_v38  ;;  %v579_v48 = vunpack.c.l.b16 %v554_v43  ;;  %v392_v16 = vpop.f32.mrf.mxu1 }
  0x97   : > { %v393_v27 = vadd.f32 %v1143_v31, %v392_v16 }
  0x98   : > { %v411_v42 = vmax.f32 %v368_v40, 0.0  ;;  %v504_v36 = vpop.permute.xlu0 %503  ;;  %v420_v40 = vmax.f32 %v391_v26, 0.0 }
  0x99   : > { %v479_v30 = vpop.permute.xlu1 %478 }
  0x9a   : > { %v537_v44 = vmul.f32 %v454_v41, %v411_v42  ;;  %v421_v42 = vmax.f32 %v393_v27, 0.0 }
  0x9b   : > { %v1174_v19 = vpop.f32.mrf.mxu2 }
  0x9c   : > { %v555_v45 = vpack.c.bf16 %v537_v44, %v537_v44 }
  0x9d   : > { %v370_v46 = vpop.f32.mrf.mxu0 }
  0x9e   : > { %v580_v49 = vunpack.c.l.b16 %v555_v45  ;;  %v371_v50 = vadd.f32 %v1143_v31, %v370_v46  ;;  %v395_v41 = vpop.f32.mrf.mxu1  ;;  %v820_v45 = vsel %vm586_vm1, %v969_v34, 0 }
  0xa0   : > { %v581_v54 = vpack.c.b16 %v580_v49, %v579_v48  ;;  %v412_v55 = vmax.f32 %v371_v50, 0.0  ;;  %v546_v48 = vmul.f32 %v499_v12, %v420_v40  ;;  %v791_v49 = vsel %vm586_vm1, %v967_v47, 0 }
  0xa1   : > { %v547_v50 = vmul.f32 %v504_v36, %v421_v42  ;;  %v401_v40 = vadd.f32 %v1143_v31, %v1158_v2 }
  0xa2   : > { %954 = vmatmul.msk.bf16.vlgmr.msrb.gmra.mxu1 %vm582_vm2, %v581_v54  ;;  %v538_v57 = vmul.f32 %v459_v51, %v412_v55  ;;  %v564_v54 = vpack.c.bf16 %v546_v48, %v546_v48  ;;  %v1198_v55 = vpop.permute.xlu1 %523 }
  0xa3   : > { %771 = vmatpush.bf16.msrb.mxu1 %v762_v39  ;;  %v405_v43 = vpop.f32.mrf.mxu2  ;;  %v424_v48 = vmax.f32 %v401_v40, 0.0 }
  0xa4   : > { %v556_v62 = vpack.c.bf16 %v538_v57, %v538_v57  ;;  %v565_v57 = vpack.c.bf16 %v547_v50, %v547_v50  ;;  %v726_v0 = vunpack.c.l.b16 %v564_v54 }
  0xa5   : > { %v372_v56 = vpop.f32.mrf.mxu0 }
  0xa6   : > { %v373_v58 = vadd.f32 %v1143_v31, %v372_v56  ;;  %v610_v6 = vunpack.c.l.b16 %v556_v62  ;;  %v529_v56 = vpop.permute.xlu2 %528 }
  0xa8   : > { %v413_v59 = vmax.f32 %v373_v58, 0.0  ;;  %v519_v58 = vpop.permute.xlu0 %518 }
  0xa9   : > { %v550_v2 = vmul.f32 %v519_v58, %v424_v48  ;;  %v1000_v58 = vld [vmem:[%s1234_s5] ss:$0 sm:$0xff] }
  0xaa   : > { %v539_v63 = vmul.f32 %v464_v60, %v413_v59  ;;  %v397_v60 = vpop.f32.mrf.mxu1  ;;  %v509_v21 = vpop.permute.xlu1 %508 }
  0xab   : > { %v407_v62 = vpop.f32.mrf.mxu2  ;;  %v398_v4 = vadd.f32 %v1143_v31, %v397_v60 }
  0xac   : > { %v557_v1 = vpack.c.bf16 %v539_v63, %v539_v63 }
  0xad   : > { %v375_v3 = vpop.f32.mrf.mxu0  ;;  %v423_v16 = vmax.f32 %v398_v4, 0.0 }
  0xae   : > { %v611_v7 = vunpack.c.l.b16 %v557_v1  ;;  %v376_v8 = vadd.f32 %v1143_v31, %v375_v3  ;;  %v727_v1 = vunpack.c.l.b16 %v565_v57  ;;  %v396_v3 = vadd.f32 %v1143_v31, %v395_v41  ;;  %v514_v22 = vpop.permute.xlu2 %513 }
  0xaf   : > { %v549_v26 = vmul.f32 %v514_v22, %v423_v16  ;;  %v403_v41 = vadd.f32 %v1143_v31, %v1174_v19 }
  0xb0   : > { %v612_v11 = vpack.c.b16 %v611_v7, %v610_v6  ;;  %v414_v13 = vmax.f32 %v376_v8, 0.0  ;;  %v406_v6 = vadd.f32 %v1143_v31, %v405_v43  ;;  %v408_v7 = vadd.f32 %v1143_v31, %v407_v62 }
  0xb1   : > { %v728_v12 = vpack.c.b16 %v727_v1, %v726_v0  ;;  %v567_v34 = vpack.c.bf16 %v549_v26, %v549_v26 }
  0xb2   : > { %956 = vmatmul.msk.bf16.vlgmr.msrb.gmra.mxu2 %vm582_vm2, %v612_v11  ;;  %v540_v18 = vmul.f32 %v469_v52, %v414_v13  ;;  %v422_v13 = vmax.f32 %v396_v3, 0.0 }
  0xb3   : > { %800 = vmatpush.bf16.msrb.mxu2 %v791_v49  ;;  %v756_v43 = vunpack.c.l.b16 %v567_v34  ;;  %v425_v49 = vmax.f32 %v403_v41, 0.0 }
  0xb4   : > { %v558_v24 = vpack.c.bf16 %v540_v18, %v540_v18  ;;  %v426_v18 = vmax.f32 %v406_v6, 0.0 }
  0xb5   : > { %v377_v17 = vpop.f32.mrf.mxu0 }
  0xb6   : > { %v378_v20 = vadd.f32 %v1143_v31, %v377_v17  ;;  %v639_v35 = vunpack.c.l.b16 %v558_v24  ;;  %v552_v27 = vmul.f32 %v529_v56, %v426_v18 }
  0xb8   : > { %v415_v23 = vmax.f32 %v378_v20, 0.0  ;;  %v427_v20 = vmax.f32 %v408_v7, 0.0  ;;  %v570_v36 = vpack.c.bf16 %v552_v27, %v552_v27 }
  0xba   : > { %v541_v25 = vmul.f32 %v474_v61, %v415_v23  ;;  %v534_v23 = vpop.permute.xlu0 %533 }
  0xbc   : > { %v559_v29 = vpack.c.bf16 %v541_v25, %v541_v25  ;;  %v548_v25 = vmul.f32 %v509_v21, %v422_v13 }
  0xbd   : > { %v380_v32 = vpop.f32.mrf.mxu0 }
  0xbe   : > { %v640_v37 = vunpack.c.l.b16 %v559_v29  ;;  %v381_v38 = vadd.f32 %v1143_v31, %v380_v32  ;;  %v566_v33 = vpack.c.bf16 %v548_v25, %v548_v25 }
  0xc0   : > { %v641_v44 = vpack.c.b16 %v640_v37, %v639_v35  ;;  %v416_v46 = vmax.f32 %v381_v38, 0.0  ;;  %v755_v42 = vunpack.c.l.b16 %v566_v33 }
  0xc2   : > { %958 = vmatmul.msk.bf16.vlgmr.msra.gmra.mxu3 %vm582_vm2, %v641_v44  ;;  %v542_v52 = vmul.f32 %v479_v30, %v416_v46  ;;  %v757_v50 = vpack.c.b16 %v756_v43, %v755_v42 }
  0xc3   : > { %829 = vmatpush.bf16.msra.mxu3 %v820_v45 }
  0xc4   : > { %v560_v61 = vpack.c.bf16 %v542_v52, %v542_v52 }
  0xc5   : > { %v382_v51 = vpop.f32.mrf.mxu0 }
  0xc6   : > { %v383_v53 = vadd.f32 %v1143_v31, %v382_v51  ;;  %v668_v9 = vunpack.c.l.b16 %v560_v61 }
  0xc8   : > { %v417_v59 = vmax.f32 %v383_v53, 0.0 }
  0xca   : > { %v543_v63 = vmul.f32 %v484_v28, %v417_v59  ;;  %v553_v28 = vmul.f32 %v534_v23, %v427_v20 }
  0xcc   : > { %v561_v5 = vpack.c.bf16 %v543_v63, %v543_v63  ;;  %v571_v37 = vpack.c.bf16 %v553_v28, %v553_v28 }
  0xcd   : > { %v385_v8 = vpop.f32.mrf.mxu0 }
  0xce   : > { %v669_v10 = vunpack.c.l.b16 %v561_v5  ;;  %v386_v11 = vadd.f32 %v1143_v31, %v385_v8  ;;  %v814_v45 = vunpack.c.l.b16 %v571_v37 }
  0xd0   : > { %v670_v17 = vpack.c.b16 %v669_v10, %v668_v9  ;;  %v418_v24 = vmax.f32 %v386_v11, 0.0 }
  0xd2   : > { %960 = vmatmul.msk.bf16.vlgmr.msra.gmra.mxu1 %vm582_vm2, %v670_v17  ;;  %964 = vmatmul.msk.bf16.vlgmr.msrb.gmra.mxu3 %vm582_vm2, %v728_v12  ;;  %v544_v30 = vmul.f32 %v1172_v15, %v418_v24  ;;  %v813_v15 = vunpack.c.l.b16 %v570_v36 }
  0xd4   : > { %v562_v38 = vpack.c.bf16 %v544_v30, %v544_v30  ;;  %v815_v52 = vpack.c.b16 %v814_v45, %v813_v15 }
  0xd5   : > { %v387_v29 = vpop.f32.mrf.mxu0 }
  0xd6   : > { %v388_v32 = vadd.f32 %v1143_v31, %v387_v29  ;;  %v697_v46 = vunpack.c.l.b16 %v562_v38  ;;  %v551_v31 = vmul.f32 %v1198_v55, %v425_v49 }
  0xd8   : > { %v419_v35 = vmax.f32 %v388_v32, 0.0  ;;  %v569_v19 = vpack.c.bf16 %v551_v31, %v551_v31 }
  0xda   : > { %v545_v39 = vmul.f32 %v1170_v14, %v419_v35  ;;  %v568_v14 = vpack.c.bf16 %v550_v2, %v550_v2  ;;  %v785_v54 = vunpack.c.l.b16 %v569_v19 }
  0xdc   : > { %v563_v44 = vpack.c.bf16 %v545_v39, %v545_v39  ;;  %v784_v53 = vunpack.c.l.b16 %v568_v14 }
  0xde   : > { %v698_v47 = vunpack.c.l.b16 %v563_v44  ;;  %v786_v56 = vpack.c.b16 %v785_v54, %v784_v53 }
  0xe0   : > { %v699_v51 = vpack.c.b16 %v698_v47, %v697_v46 }
  0xe2   : > { %962 = vmatmul.msk.bf16.vlgmr.msra.gmra.mxu2 %vm582_vm2, %v699_v51  ;;  %966 = vmatmul.msk.bf16.vlgmr.msrb.gmra.mxu1 %vm582_vm2, %v757_v50 }
  0xe3   : > { %970 = vmatmul.msk.bf16.vlgmr.msra.gmra.mxu3 %vm582_vm2, %v815_v52 }
  0xf2   : > { %968 = vmatmul.msk.bf16.vlgmr.msrb.gmra.mxu2 %vm582_vm2, %v786_v56 }
 0x11f   : > { %v599_v57 = vpop.f32.mrf.mxu1 }
 0x120   : > { %v604_v55 = vadd.f32 %v1000_v58, %v599_v57 }
 0x127   : > { %v601_v61 = vpop.f32.mrf.mxu1 }
 0x128   : > { %v605_v9 = vadd.f32 %v1000_v58, %v601_v61 }
 0x135   : > { %v628_v60 = vpop.f32.mrf.mxu2 }
 0x136   : > { %v633_v4 = vadd.f32 %v628_v60, %v604_v55 }
 0x13d   : > { %v630_v63 = vpop.f32.mrf.mxu2 }
 0x13e   : > { %v634_v12 = vadd.f32 %v630_v63, %v605_v9 }
 0x145   : > { %v657_v59 = vpop.f32.mrf.mxu3 }
 0x146   : > { %v662_v6 = vadd.f32 %v657_v59, %v633_v4 }
 0x14d   : > { %v659_v62 = vpop.f32.mrf.mxu3 }
 0x14e   : > { %v663_v13 = vadd.f32 %v659_v62, %v634_v12 }
 0x14f   : > { %v686_v0 = vpop.f32.mrf.mxu1 }
 0x150   : > { %v691_v7 = vadd.f32 %v686_v0, %v662_v6 }
 0x155   : > { %v744_v1 = vpop.f32.mrf.mxu3 }
 0x157   : > { %v688_v5 = vpop.f32.mrf.mxu1 }
 0x158   : > { %v692_v18 = vadd.f32 %v688_v5, %v663_v13 }
 0x15d   : > { %v746_v8 = vpop.f32.mrf.mxu3 }
 0x15f   : > { %v773_v17 = vpop.f32.mrf.mxu1 }
 0x165   : > { %v715_v3 = vpop.f32.mrf.mxu2 }
 0x166   : > { %v720_v10 = vadd.f32 %v715_v3, %v691_v7  ;;  %v831_v22 = vpop.f32.mrf.mxu3 }
 0x167   : > { %v775_v27 = vpop.f32.mrf.mxu1 }
 0x168   : > { %v749_v16 = vadd.f32 %v744_v1, %v720_v10 }
 0x16a   : > { %v778_v21 = vadd.f32 %v773_v17, %v749_v16 }
 0x16d   : > { %v717_v11 = vpop.f32.mrf.mxu2 }
 0x16e   : > { %v721_v20 = vadd.f32 %v717_v11, %v692_v18  ;;  %v833_v32 = vpop.f32.mrf.mxu3 }
 0x170   : > { %v750_v25 = vadd.f32 %v746_v8, %v721_v20 }
 0x172   : > { %v779_v28 = vadd.f32 %v775_v27, %v750_v25 }
 0x175   : > { %v802_v23 = vpop.f32.mrf.mxu2 }
 0x176   : > { %v807_v24 = vadd.f32 %v802_v23, %v778_v21 }
 0x178   : > { %v836_v26 = vadd.f32 %v831_v22, %v807_v24 }
 0x17a   : > { %839 = vst.msk [vmem:[%s251_s25] sm:$0xff] %vm838_vm3, %v836_v26 }
 0x17d   : > { %v804_v29 = vpop.f32.mrf.mxu2 }
 0x17e   : > { %v808_v30 = vadd.f32 %v804_v29, %v779_v28 }
 0x180   : > { %v837_v33 = vadd.f32 %v833_v32, %v808_v30 }
 0x182   : > { %841 = vst.msk [vmem:[%s251_s25 + $0x8] sm:$0x1] %vm840_vm4, %v837_v33 }
 0x183 PF: > { %s16_s21 = sadd.s32 1, %s1007_s21  }
 0x184   : > { %p13_p4 = scmp.ge.s32.totalorder %s16_s21, 4  }
 0x186   :  { %15 = sbr.rel (!%p13_p4) target bundleno = 1 (0x1), region = 82 }

</bundles_post_ra>
